<compile_context>
chip_gen: v6e
topology: v6e:2x2x1
jax: 0.10.0
libtpu: 0.0.40
codegen_flags: <defaults>
</compile_context>

<pallas_src>
import functools
import math

import jax
import jax.numpy as jnp
from jax.experimental import pallas as pl
from jax.experimental.pallas import tpu as pltpu

# ---- small deterministic demo shapes ----------------------------------------
B = 2            # batch
T = 8            # sequence length
D = 32           # d_model
MAX_LEN = 5000   # matches the module default


def _make_pe(max_len: int, d_model: int) -> jnp.ndarray:
    """Sinusoidal positional-encoding buffer, identical to the PyTorch module."""
    position = jnp.arange(max_len, dtype=jnp.float32)[:, None]                  # (L, 1)
    div_term = jnp.exp(
        jnp.arange(0, d_model, 2, dtype=jnp.float32) * -(math.log(10000.0) / d_model)
    )                                                                           # (D/2,)
    ang = position * div_term                                                   # (L, D/2)
    pe = jnp.zeros((max_len, d_model), jnp.float32)
    pe = pe.at[:, 0::2].set(jnp.sin(ang))
    pe = pe.at[:, 1::2].set(jnp.cos(ang))
    return pe[None]                                                             # (1, L, D)


def _pos_enc_kernel(x_ref, pe_ref, o_ref, *, xscale: float):
    # x_ref / o_ref : (tb, tt, D) activation tile
    # pe_ref        : (1,  tt, D) positional-encoding tile (broadcast over batch)
    o_ref[...] = x_ref[...] * xscale + pe_ref[...]


def positional_encoding(x: jnp.ndarray, pe_full: jnp.ndarray, *, tb: int = 1, tt=None):
    """forward(x) of PositionalEncoding (eval mode).

    x:       (B, T, D) activations (f32).
    pe_full: (1, max_len, D) precomputed sinusoidal buffer (max_len >= T).
    """
    b, t, d = x.shape
    assert pe_full.shape[0] == 1 and pe_full.shape[1] >= t and pe_full.shape[2] == d
    assert b % tb == 0
    if tt is None:
        # Largest sublane-dense seq tile: full T for short sequences, otherwise a
        # 512-row tile (multiple of 8) -- large enough to sit near the HBM
        # roofline on v5e/v6e while double-buffered tiles stay well inside
        # v7x's 64 MiB VMEM.
        tt = t if t <= 512 else 512

    xscale = math.sqrt(d)
    # Seq tiles outer, batch tiles inner: the pe block index is constant across
    # the inner axis, so each pe tile is fetched once and stays resident in VMEM
    # while the batch is swept.
    grid = (pl.cdiv(t, tt), b // tb)

    return pl.pallas_call(
        functools.partial(_pos_enc_kernel, xscale=xscale),
        out_shape=jax.ShapeDtypeStruct((b, t, d), x.dtype),
        grid=grid,
        in_specs=[
            pl.BlockSpec((tb, tt, d), lambda ti, bi: (bi, ti, 0)),   # x
            pl.BlockSpec((1, tt, d), lambda ti, bi: (0, ti, 0)),     # pe (batch-invariant)
        ],
        out_specs=pl.BlockSpec((tb, tt, d), lambda ti, bi: (bi, ti, 0)),
        input_output_aliases={0: 0},   # out reuses x's HBM buffer when donated
        compiler_params=pltpu.CompilerParams(
            dimension_semantics=("parallel", "parallel"),
            vmem_limit_bytes=32 * 1024 * 1024,
        ),
    )(x, pe_full)


def _reference(x, pe_full):
    return x * math.sqrt(x.shape[-1]) + pe_full[:, : x.shape[1], :]


if __name__ == "__main__":
    key = jax.random.PRNGKey(0)
    x = jax.random.normal(key, (B, T, D), jnp.float32)
    pe_full = _make_pe(MAX_LEN, D)

    # Pure-JAX reference of the PyTorch forward (computed first, before the
    # aliased kernel call).
    y_ref = _reference(x, pe_full)

    y = positional_encoding(x, pe_full)
    jax.block_until_ready(y)

    assert y.shape == (B, T, D)
    assert bool(jnp.all(jnp.isfinite(y)))
    assert bool(jnp.allclose(y, y_ref, atol=1e-5, rtol=1e-5))

    print("KERNEL_OK")
</pallas_src>

<mosaic_0001>
module attributes {stable_mosaic.version = 11 : i64} {
  func.func @_pos_enc_kernel(%arg0: i32, %arg1: i32, %arg2: memref<1x8x32xf32, #tpu.memory_space<vmem>>, %arg3: memref<1x8x32xf32, #tpu.memory_space<vmem>>, %arg4: memref<1x8x32xf32, #tpu.memory_space<vmem>>) attributes {dimension_semantics = [#tpu.dimension_semantics<parallel>, #tpu.dimension_semantics<parallel>], iteration_bounds = array<i64: 1, 2>, scalar_prefetch = 0 : i64, scratch_operands = 0 : i64, tpu.core_type = #tpu.core_type<tc>, window_params = [{transform_indices = @transform_0, window_bounds = array<i64: 1, 8, 32>}, {transform_indices = @transform_1, window_bounds = array<i64: 1, 8, 32>}, {transform_indices = @transform_2, window_bounds = array<i64: 1, 8, 32>}]} {
    %c0 = arith.constant 0 : index
    %c0_0 = arith.constant 0 : index
    %c0_1 = arith.constant 0 : index
    %0 = vector.load %arg2[%c0, %c0_0, %c0_1] : memref<1x8x32xf32, #tpu.memory_space<vmem>>, vector<1x8x32xf32>
    %cst = arith.constant 5.65685415 : f32
    %1 = vector.broadcast %cst : f32 to vector<1x8x32xf32>
    %2 = arith.mulf %0, %1 : vector<1x8x32xf32>
    %c0_2 = arith.constant 0 : index
    %c0_3 = arith.constant 0 : index
    %c0_4 = arith.constant 0 : index
    %3 = vector.load %arg3[%c0_2, %c0_3, %c0_4] : memref<1x8x32xf32, #tpu.memory_space<vmem>>, vector<1x8x32xf32>
    %4 = arith.addf %2, %3 : vector<1x8x32xf32>
    %c0_5 = arith.constant 0 : index
    %c0_6 = arith.constant 0 : index
    %c0_7 = arith.constant 0 : index
    %5 = vector.load %arg4[%c0_5, %c0_6, %c0_7] : memref<1x8x32xf32, #tpu.memory_space<vmem>>, vector<1x8x32xf32>
    tpu.vector_store %arg4[%c0_5, %c0_6, %c0_7], %4 {strides = array<i32>} : memref<1x8x32xf32, #tpu.memory_space<vmem>>, vector<1x8x32xf32>,
    return
  }
  func.func @transform_0(%arg0: i32, %arg1: i32) -> (i32, i32, i32) {
    %c0_i32 = arith.constant 0 : i32
    %c0_i32_0 = arith.constant 0 : i32
    return %arg1, %arg0, %c0_i32 : i32, i32, i32
  }
  func.func @transform_1(%arg0: i32, %arg1: i32) -> (i32, i32, i32) {
    %c0_i32 = arith.constant 0 : i32
    %c0_i32_0 = arith.constant 0 : i32
    %c0_i32_1 = arith.constant 0 : i32
    return %c0_i32, %arg0, %c0_i32_0 : i32, i32, i32
  }
  func.func @transform_2(%arg0: i32, %arg1: i32) -> (i32, i32, i32) {
    %c0_i32 = arith.constant 0 : i32
    %c0_i32_0 = arith.constant 0 : i32
    return %arg1, %arg0, %c0_i32 : i32, i32, i32
  }
}

</mosaic_0001>

<bundles_post_ra>
// kernel: tpu_custom_call.1
= control target key start
LH: loop header
LB: loop body
LE: loop exit
PB: predicated region body
PF: predicated region fallthrough
CT: control target
= control target key end

     0   :  { %7 = vsyncpa [#allocation3], 0  ;;  %s649_s0 = inlined_call_operand.hbm [shape: f32[2,8,32], index: 0, kind: input, shape index: {}, may-alias: {0,2}]   ;;  %s650_s1 = inlined_call_operand.vmem [shape: f32[1,5000,32], index: 1, kind: input, shape index: {}]   ;;  %s651_s2 = inlined_call_operand.hbm [shape: f32[2,8,32], index: 2, kind: output, shape index: {}, may-alias: {0,2}]  }
   0x1   :  { %9 = vsyncpa [#allocation3 + $0x1], 0 }
   0x2   :  { %10 = vsyncpa [#allocation4], 0 }
   0x3   :  { %12 = vsyncpa [#allocation4 + $0x1], 0  ;;  %s512_s9 = smov 0   ;;  %s514_s10 = smov 0  }
   0x4   :  { %s516_s11 = smov 0   ;;  %s518_s12 = smov 0  }
   0x5   :  { %s520_s13 = smov 0   ;;  %s522_s14 = smov 0  }
   0x6 LB: > { %s309_s15 = sadd.s32 4294967295, %s493_s14   ;;  %s310_s16 = sadd.s32 4294967294, %s493_s14   ;;  %s493_s14 = sphi %s522_s14, %s18_s14   ;;  %s489_s13 = sphi %s520_s13, %s663_s13   ;;  %s485_s12 = sphi %s518_s12, %s662_s12   ;;  %s481_s11 = sphi %s516_s11, %s661_s11   ;;  %s477_s10 = sphi %s514_s10, %s660_s10   ;;  %s473_s9 = sphi %s512_s9, %s659_s9  }
   0x7   : > { %s27_s17 = sadd.s32 1, %s489_s13  ;;  %s39_s18 = sadd.s32 1, %s481_s11 }
   0x8   : > { %p28_p0 = scmp.ge.s32.totalorder %s27_s17, 2  ;;  %p46_p1 = scmp.ne.s32.totalorder %s481_s11, %s477_s10 }
   0x9   : > { %p47_p2 = scmp.eq.s32.totalorder %s493_s14, 0  ;;  %p52_p3 = scmp.ne.s32.totalorder %s477_s10, %s473_s9 }
   0xa   : > { %s665_s17 = smov (%p28_p0, %s27_s17), 0  ;;  %p53_p5 = scmp.eq.s32.totalorder %s309_s15, 0 }
   0xb   : > { %p553_p4 = por %p47_p2, %p46_p1  ;;  %s34_s20 = ssub.s32 %s489_s13, %s665_s17 }
   0xc   : > { %p104_p6 = scmp.eq.s32.totalorder %s309_s15, 1  ;;  %p37_p7 = scmp.eq.s32.totalorder %s34_s20, 0 }
   0xd   : > { %p559_p8 = por %p53_p5, %p52_p3  ;;  %p110_p10 = scmp.eq.s32.totalorder %s310_s16, 1 }
   0xe   : > { %p563_p9 = por %p104_p6, %p46_p1  ;;  %p335_p13 = scmp.lt.s32.totalorder %s493_s14, 2 }
   0xf   : > { %s568_s23 = scalar_select %p37_p7, %s481_s11, %s39_s18  }
  0x10   : > { %p570_p11 = por %p110_p10, %p52_p3  ;;  %s137_s25 = sand.u32 1, %s481_s11  }
  0x11   : > { %s314_s26 = sshll.u32 %s137_s25, 3  ;;  %s315_s27 = sshll.u32 %s489_s13, 7 }
  0x12   : > { %s655_s24 = scalar_select %p570_p11, 1, 0 }
  0x13   : > { %s147_s30 = scalar_lea.hbm %s649_s0, %s315_s27  ;;  %s141_s3 = scalar_lea.vmem [#allocation2], %s314_s26 }
  0x14   : > { %s149_s4 = sshll.u32 %s141_s3, 4  ;;  %p583_p0 = pnand %p335_p13, %p553_p4  ;;  %s150_s4 = int_to_ptr.vmem [resolvable:$true] %s149_s4 }
  0x15   : > { %p316_p1 = scmp.ge.s32.totalorder %s493_s14, 1  ;;  %p154_p2 = scmp.lt.s32.totalorder %s493_s14, 3 }
  0x16   : > { %s138_s6 = scalar_lea.sflag [#allocation3], %s137_s25  ;;  %p387_p3 = pneg %p583_p0 }
  0x17   : > { %s398_s7 = scalar_lea.vmem %s150_s4, 128  ;;  %s495_s8 = smov [#allocation2]  }
  0x18   : > { %p399_p5 = scmp.ne.s32.totalorder %s150_s4, %s398_s7  ;;  %s403_s15 = sshll.u32 %s495_s8, 4  ;;  %s404_s15 = int_to_ptr.vmem [resolvable:$false] %s403_s15 }
  0x19   : > { %s405_s16 = scalar_lea.vmem %s404_s15, 256  ;;  %p406_p10 = scmp.lt.s32.totalorder %s150_s4, %s404_s15 }
  0x1a   : > { %p401_p6 = pnand %p399_p5, %p387_p3  ;;  %p407_p12 = scmp.lt.s32.totalorder %s405_s16, %s398_s7 }
  0x1c   : > { %p402_p7 = pneg %p401_p6  ;;  %p408_p4 = por %p407_p12, %p406_p10 }
  0x1e   : > { %p409_p13 = pnand %p408_p4, %p402_p7 }
  0x20   : > { %412 = shalt.err (!%p409_p13)
}
  0x21   : > { %330 = dma.hbm_to_vmem [thread:$0]  (!%p583_p0), %s147_s30, 128, %s150_s4, %s138_s6  }
  0x22   : > { %p155_p11 = pnand %p316_p1, %p154_p2 }
  0x23   : > { %s598_s18 = sand.u32 (!%p155_p11), 1, %s477_s10  }
  0x24   : > { %158 = sbr.rel (%p155_p11) target bundleno = 66 (0x42), region = 28  ;;  %s317_s19 = sshll.u32 (!%p155_p11), %s598_s18, 3 }
  0x25   : > { %s161_s20 = scalar_lea.sflag (!%p155_p11), [#allocation3], %s598_s18  ;;  %s164_s25 = scalar_lea.vmem (!%p155_p11), [#allocation2], %s317_s19 }
  0x29   : > { %464 = dma.done.wait (%p559_p8), %s161_s20, 128  }
  0x2a   : > { %466 = vsyncadd (%p559_p8), %s161_s20, 4294967168  ;;  %v193_v0 = vld [vmem:[%s164_s25] sm:$0xff]  ;;  %s188_s28 = scalar_lea.vmem [#allocation5], %s317_s19  ;;  %s320_s30 = sshll.u32 %s485_s12, 7  ;;  %vm197_vm0 = vcmask 261120  }
  0x2b   : > { %v195_v1 = vld [vmem:[%s650_s1] sm:$0xff]  ;;  %s214_s29 = sshll.u32 %s188_s28, 4  ;;  %v194_v2 = vmul.f32 5.656854, %v193_v0  ;;  %s212_s21 = scalar_lea.hbm %s651_s2, %s320_s30  ;;  %s215_s29 = int_to_ptr.vmem [resolvable:$true] %s214_s29 }
  0x2c   : > { %s200_s5 = scalar_lea.sflag [#allocation4], %s598_s18  ;;  %s413_s6 = scalar_lea.vmem %s215_s29, 128 }
  0x2d   : > { %v196_v3 = vadd.f32 %v195_v1, %v194_v2  ;;  %p414_p8 = scmp.ne.s32.totalorder %s215_s29, %s413_s6  ;;  %s496_s7 = smov [#allocation5]  }
  0x2e   : > { %s417_s8 = sshll.u32 %s496_s7, 4  ;;  %s418_s8 = int_to_ptr.vmem [resolvable:$false] %s417_s8 }
  0x2f   : > { %198 = vst.msk [vmem:[%s188_s28] sm:$0xff] %vm197_vm0, %v196_v3  ;;  %p415_p11 = pnand %p414_p8, %p563_p9  ;;  %s419_s15 = scalar_lea.vmem %s418_s8, 256 }
  0x30   : > { %p420_p0 = scmp.lt.s32.totalorder %s215_s29, %s418_s8  ;;  %p421_p1 = scmp.lt.s32.totalorder %s419_s15, %s413_s6 }
  0x31   : > { %p416_p12 = pneg %p415_p11 }
  0x32   : > { %p422_p2 = por %p421_p1, %p420_p0 }
  0x34   : > { %p423_p3 = pnand %p422_p2, %p416_p12 }
  0x36   : > { %426 = shalt.err (!%p423_p3)
}
  0x37   : > { %s427_s12 = scalar_lea.hbm %s212_s21, 128  ;;  %s431_s19 = scalar_lea.hbm %s651_s2, 256 }
  0x38   : > { %p428_p5 = scmp.ne.s32.totalorder %s212_s21, %s427_s12  ;;  %p432_p10 = scmp.lt.s32.totalorder %s212_s21, %s651_s2 }
  0x39   : > { %p433_p4 = scmp.lt.s32.totalorder %s431_s19, %s427_s12 }
  0x3a   : > { %p429_p6 = pnand %p428_p5, %p563_p9 }
  0x3b   : > { %p434_p13 = por %p433_p4, %p432_p10 }
  0x3c   : > { %p430_p7 = pneg %p429_p6 }
  0x3e   : > { %p435_p8 = pnand %p434_p13, %p430_p7 }
  0x40   : > { %438 = shalt.err (!%p435_p8)
}
  0x41   : > { %325 = dma.vmem_to_hbm [thread:$0]  (%p563_p9), %s215_s29, 128, %s212_s21, %s200_s5  }
  0x42 PF: > { %s226_s26 = sand.u32 1, %s473_s9   ;;  %p657_p11 = scmp.ne.s32.totalorder %s655_s24, 0 }
  0x43   : > { %p658_p12 = scmp.ge.s32.totalorder %s493_s14, 2  ;;  %s227_s27 = scalar_lea.sflag [#allocation4], %s226_s26 }
  0x45   : > { %p332_p0 = pnand %p658_p12, %p657_p11 }
  0x47   : > { %p333_p1 = pneg %p332_p0 }
  0x49   : > { %468 = dma.done.wait (%p333_p1), %s227_s27, 128  }
  0x4a   : > { %470 = vsyncadd (%p333_p1), %s227_s27, 4294967168  ;;  %s18_s14 = sadd.s32 1, %s493_s14   ;;  %s659_s9 = smov %s477_s10 }
  0x4b   : > { %p15_p2 = scmp.ge.s32.totalorder %s18_s14, 4   ;;  %s660_s10 = smov %s481_s11 }
  0x4c   : > { %s661_s11 = smov %s568_s23  ;;  %s662_s12 = smov %s489_s13 }
  0x4d   : > { %s663_s13 = smov %s665_s17  ;;  %17 = sbr.rel (!%p15_p2) target bundleno = 6 (0x6), region = 76 }
  0x52   :  { %232 = vsyncpa [#allocation3], 1 }
  0x53   :  { %234 = vsyncpa [#allocation3 + $0x1], 1 }
  0x54   :  { %235 = vsyncpa [#allocation4], 1 }
  0x55   :  { %237 = vsyncpa [#allocation4 + $0x1], 1 }

</bundles_post_ra>
